<compile_context>
chip_gen: v5e
topology: v5e:2x2
jax: 0.10.0
libtpu: 0.0.40
codegen_flags: <defaults>
</compile_context>

<pallas_src>
import functools

import jax
import jax.numpy as jnp
from jax.experimental import pallas as pl
from jax.experimental.pallas import tpu as pltpu


def _round_up(x, m):
    return (x + m - 1) // m * m


def _dueling_dqn_kernel(
    x_ref,                       # (B, in_rows)
    w_ref,                       # (in_rows + 2*hidden, 128) packed weights
    b_ref,                       # (3, 128) packed biases
    out_ref,                     # (B, 128) lane-dense slab
    *, in_rows, hidden, num_actions, batch,
):
    # Static, sublane-aligned carving of the packed slabs (zero cost).
    w1 = w_ref[0:in_rows, :]                                  # (in_rows, 128)
    wcat = w_ref[in_rows:in_rows + hidden, :]                 # (128, 128)
    wout = w_ref[in_rows + hidden:in_rows + 2 * hidden, :]    # (128, 128)
    b1 = b_ref[0:1, :]
    bcat = b_ref[1:2, :]
    bout = b_ref[2:3, :]

    x = x_ref[...]

    # feature = ReLU(x @ W1 + b1)                              (B, 128)
    h = jnp.maximum(
        jnp.dot(x, w1, preferred_element_type=jnp.float32) + b1, 0.0)

    # fused value/advantage hidden: ReLU(h @ [Wv1|Wa1] + [bv1|ba1])   (B, 128)
    g = jnp.maximum(
        jnp.dot(h, wcat, preferred_element_type=jnp.float32) + bcat, 0.0)

    # fused output: cols 0..A-1 = advantage, col A = value, rest exactly 0
    slab = jnp.dot(g, wout, preferred_element_type=jnp.float32) + bout

    value = slab[:, num_actions:num_actions + 1]               # (B, 1)

    # Padded columns are exactly 0 by construction, so only the value column
    # needs excluding from the advantage sum -> no iota/mask required.
    adv_mean = (jnp.sum(slab) - jnp.sum(value)) * (1.0 / float(batch * num_actions))

    # Lane-dense 128-wide store (unmasked vst).  Cols 0..A-1 hold
    # q = value + (advantage - mean); the wrapper slices them off.
    # (Col A becomes 2*value - mean; do not reuse it downstream.)
    out_ref[...] = slab + value - adv_mean


def pack_params(params):
    """One-time packing of the 10 Linear params into 2 device buffers."""
    (w1, b1, wv1, bv1, wv2, bv2, wa1, ba1, wa2, ba2) = params
    input_dim, hidden = w1.shape                 # (D, 128)
    half = wv1.shape[1]                          # 64
    num_actions = wa2.shape[1]
    assert 2 * half == hidden
    assert num_actions + 1 <= hidden, "q+value columns must fit one 128 lane tile"

    out_width = hidden                           # 128 (lane-dense)
    in_rows = _round_up(input_dim, 8)            # sublane-aligned W1 block

    # Fused hidden weight: [Wv1 | Wa1]  (128, 128)
    wcat = jnp.concatenate([wv1, wa1], axis=1)
    bcat = jnp.concatenate([bv1, ba1], axis=1)

    # Fused, block-structured output weight (128, 128):
    #   advantage head -> cols 0..A-1, value head -> col A, rest exactly 0.
    wout = jnp.zeros((hidden, out_width), jnp.float32)
    wout = wout.at[half:, 0:num_actions].set(wa2)
    wout = wout.at[:half, num_actions:num_actions + 1].set(wv2)
    bout = jnp.zeros((1, out_width), jnp.float32)
    bout = bout.at[:, 0:num_actions].set(ba2)
    bout = bout.at[:, num_actions:num_actions + 1].set(bv2)

    def pad_to(a, rows, cols):
        return jnp.pad(a, ((0, rows - a.shape[0]), (0, cols - a.shape[1])))

    w_packed = jnp.concatenate(
        [pad_to(w1, in_rows, out_width), wcat, wout], axis=0)     # (in_rows+256, 128)
    b_packed = jnp.concatenate([pad_to(b1, 1, out_width),
                                pad_to(bcat, 1, out_width),
                                pad_to(bout, 1, out_width)], axis=0)   # (3, 128)

    packed = (jax.device_put(w_packed), jax.device_put(b_packed))
    meta = dict(input_dim=input_dim, in_rows=in_rows, hidden=hidden,
                num_actions=num_actions, out_width=out_width)
    return packed, meta


def dueling_dqn_forward(x, packed, meta):
    w_packed, b_packed = packed
    batch = x.shape[0]
    input_dim = meta["input_dim"]
    in_rows = meta["in_rows"]
    hidden = meta["hidden"]
    num_actions = meta["num_actions"]
    out_width = meta["out_width"]

    if input_dim != in_rows:
        # Pad x columns to the sublane-aligned W1 block (zero rows of W1 make
        # the padding value irrelevant).  No-op for input_dim % 8 == 0.
        x = jnp.pad(x, ((0, 0), (0, in_rows - input_dim)))

    flops = 2 * batch * (in_rows * hidden + hidden * hidden + hidden * out_width)
    bytes_accessed = 4 * (batch * in_rows + w_packed.size + b_packed.size
                          + batch * out_width)

    vmem = pl.BlockSpec(memory_space=pltpu.MemorySpace.VMEM)
    kernel = functools.partial(
        _dueling_dqn_kernel, in_rows=in_rows, hidden=hidden,
        num_actions=num_actions, batch=batch)

    slab = pl.pallas_call(
        kernel,
        out_shape=jax.ShapeDtypeStruct((batch, out_width), jnp.float32),
        in_specs=[vmem, vmem, vmem],
        out_specs=vmem,
        cost_estimate=pl.CostEstimate(
            flops=flops, transcendentals=0, bytes_accessed=bytes_accessed),
    )(x, w_packed, b_packed)

    # q-values are the leading num_actions lanes of the lane-dense slab.
    return slab[:, :num_actions]


def init_params(key, input_dim, num_actions):
    """Deterministic synthetic init; weights stored as (in, out)."""
    def dense(k, fan_in, fan_out):
        kw, kb = jax.random.split(k)
        scale = 1.0 / jnp.sqrt(jnp.float32(fan_in))
        w = jax.random.uniform(kw, (fan_in, fan_out), jnp.float32, -scale, scale)
        b = jax.random.uniform(kb, (1, fan_out), jnp.float32, -scale, scale)
        return w, b

    k1, k2, k3, k4, k5 = jax.random.split(key, 5)
    w1, b1 = dense(k1, input_dim, 128)
    wv1, bv1 = dense(k2, 128, 64)
    wv2, bv2 = dense(k3, 64, 1)
    wa1, ba1 = dense(k4, 128, 64)
    wa2, ba2 = dense(k5, 64, num_actions)
    return (w1, b1, wv1, bv1, wv2, bv2, wa1, ba1, wa2, ba2)


def reference_forward(x, params):
    """Pure-JAX reference mirroring the PyTorch module semantics
    (advantage.mean() with no dim -> global mean over all elements)."""
    (w1, b1, wv1, bv1, wv2, bv2, wa1, ba1, wa2, ba2) = params
    h = jnp.maximum(x @ w1 + b1, 0.0)
    value = jnp.maximum(h @ wv1 + bv1, 0.0) @ wv2 + bv2
    adv = jnp.maximum(h @ wa1 + ba1, 0.0) @ wa2 + ba2
    return value + (adv - jnp.mean(adv))


if __name__ == "__main__":
    batch = 8
    input_dim = 32
    num_actions = 6

    key = jax.random.PRNGKey(0)
    kx, kp = jax.random.split(key)
    x = jax.random.normal(kx, (batch, input_dim), dtype=jnp.float32)
    params = init_params(kp, input_dim, num_actions)

    # One-time packing (cached by the caller; not part of the forward path).
    packed, meta = pack_params(params)

    q = dueling_dqn_forward(x, packed, meta)
    q = jax.block_until_ready(q)

    q_ref = reference_forward(x, params)
    assert q.shape == (batch, num_actions)
    assert jnp.allclose(q, q_ref, atol=1e-4, rtol=1e-4)

    print("KERNEL_OK")
</pallas_src>

<mosaic_0001>
module attributes {stable_mosaic.version = 11 : i64} {
  func.func @_dueling_dqn_kernel(%arg0: memref<8x32xf32, #tpu.memory_space<vmem>>, %arg1: memref<288x128xf32, #tpu.memory_space<vmem>>, %arg2: memref<3x128xf32, #tpu.memory_space<vmem>>, %arg3: memref<8x128xf32, #tpu.memory_space<vmem>>) attributes {dimension_semantics = [], scalar_prefetch = 0 : i64, scratch_operands = 0 : i64, tpu.core_type = #tpu.core_type<tc>} {
    %c0 = arith.constant 0 : index
    %c0_0 = arith.constant 0 : index
    %0 = vector.load %arg1[%c0, %c0_0] : memref<288x128xf32, #tpu.memory_space<vmem>>, vector<32x128xf32>
    %c32 = arith.constant 32 : index
    %c0_1 = arith.constant 0 : index
    %1 = vector.load %arg1[%c32, %c0_1] : memref<288x128xf32, #tpu.memory_space<vmem>>, vector<128x128xf32>
    %c160 = arith.constant 160 : index
    %c0_2 = arith.constant 0 : index
    %2 = vector.load %arg1[%c160, %c0_2] : memref<288x128xf32, #tpu.memory_space<vmem>>, vector<128x128xf32>
    %c0_3 = arith.constant 0 : index
    %c0_4 = arith.constant 0 : index
    %3 = vector.load %arg2[%c0_3, %c0_4] : memref<3x128xf32, #tpu.memory_space<vmem>>, vector<1x128xf32>
    %c1 = arith.constant 1 : index
    %c0_5 = arith.constant 0 : index
    %4 = vector.load %arg2[%c1, %c0_5] : memref<3x128xf32, #tpu.memory_space<vmem>>, vector<1x128xf32>
    %c2 = arith.constant 2 : index
    %c0_6 = arith.constant 0 : index
    %5 = vector.load %arg2[%c2, %c0_6] : memref<3x128xf32, #tpu.memory_space<vmem>>, vector<1x128xf32>
    %c0_7 = arith.constant 0 : index
    %c0_8 = arith.constant 0 : index
    %6 = vector.load %arg0[%c0_7, %c0_8] : memref<8x32xf32, #tpu.memory_space<vmem>>, vector<8x32xf32>
    %cst = arith.constant dense<0.000000e+00> : vector<8x128xf32>
    %7 = tpu.matmul %6, %0, %cst {dimension_numbers = #tpu.dot_dimension_numbers<[1], [0], [0], [1], [0, 0, 1, 1], [], []>} : vector<8x32xf32>, vector<32x128xf32>, vector<8x128xf32> -> vector<8x128xf32>
    %8 = vector.broadcast %3 : vector<1x128xf32> to vector<8x128xf32>
    %9 = arith.addf %7, %8 : vector<8x128xf32>
    %cst_9 = arith.constant 0.000000e+00 : f32
    %10 = vector.broadcast %cst_9 : f32 to vector<8x128xf32>
    %11 = arith.maximumf %9, %10 : vector<8x128xf32>
    %cst_10 = arith.constant dense<0.000000e+00> : vector<8x128xf32>
    %12 = tpu.matmul %11, %1, %cst_10 {dimension_numbers = #tpu.dot_dimension_numbers<[1], [0], [0], [1], [0, 0, 1, 1], [], []>} : vector<8x128xf32>, vector<128x128xf32>, vector<8x128xf32> -> vector<8x128xf32>
    %13 = vector.broadcast %4 : vector<1x128xf32> to vector<8x128xf32>
    %14 = arith.addf %12, %13 : vector<8x128xf32>
    %cst_11 = arith.constant 0.000000e+00 : f32
    %15 = vector.broadcast %cst_11 : f32 to vector<8x128xf32>
    %16 = arith.maximumf %14, %15 : vector<8x128xf32>
    %cst_12 = arith.constant dense<0.000000e+00> : vector<8x128xf32>
    %17 = tpu.matmul %16, %2, %cst_12 {dimension_numbers = #tpu.dot_dimension_numbers<[1], [0], [0], [1], [0, 0, 1, 1], [], []>} : vector<8x128xf32>, vector<128x128xf32>, vector<8x128xf32> -> vector<8x128xf32>
    %18 = vector.broadcast %5 : vector<1x128xf32> to vector<8x128xf32>
    %19 = arith.addf %17, %18 : vector<8x128xf32>
    %20 = vector.extract_strided_slice %19 {offsets = [0, 6], sizes = [8, 1], strides = [1, 1]} : vector<8x128xf32> to vector<8x1xf32>
    %21 = vector.shape_cast %19 : vector<8x128xf32> to vector<1x8x128xf32>
    %cst_13 = arith.constant dense<0.000000e+00> : vector<1xf32>
    %22 = vector.multi_reduction <add>, %21, %cst_13 [1, 2] : vector<1x8x128xf32> to vector<1xf32>
    %23 = vector.shape_cast %22 : vector<1xf32> to vector<1x1x1xf32>
    %24 = vector.extract %23[0, 0, 0] : f32 from vector<1x1x1xf32>
    %25 = vector.shape_cast %20 : vector<8x1xf32> to vector<1x8x1xf32>
    %cst_14 = arith.constant dense<0.000000e+00> : vector<1xf32>
    %26 = vector.multi_reduction <add>, %25, %cst_14 [1, 2] : vector<1x8x1xf32> to vector<1xf32>
    %27 = vector.shape_cast %26 : vector<1xf32> to vector<1x1x1xf32>
    %28 = vector.extract %27[0, 0, 0] : f32 from vector<1x1x1xf32>
    %29 = arith.subf %24, %28 : f32
    %cst_15 = arith.constant 0.020833334 : f32
    %30 = arith.mulf %29, %cst_15 : f32
    %31 = vector.broadcast %20 : vector<8x1xf32> to vector<8x128xf32>
    %32 = arith.addf %19, %31 : vector<8x128xf32>
    %33 = vector.broadcast %30 : f32 to vector<8x128xf32>
    %34 = arith.subf %32, %33 : vector<8x128xf32>
    %c0_16 = arith.constant 0 : index
    %c0_17 = arith.constant 0 : index
    %35 = vector.load %arg3[%c0_16, %c0_17] : memref<8x128xf32, #tpu.memory_space<vmem>>, vector<8x128xf32>
    tpu.vector_store %arg3[%c0_16, %c0_17], %34 {strides = array<i32>} : memref<8x128xf32, #tpu.memory_space<vmem>>, vector<8x128xf32>,
    return
  }
}

</mosaic_0001>

<bundles_post_ra>
// kernel: tpu_custom_call.1
= control target key start
LH: loop header
LB: loop body
LE: loop exit
PB: predicated region body
PF: predicated region fallthrough
CT: control target
= control target key end

     0   :  { %8 = vsyncpa [#allocation3], 0  ;;  %s379_s0 = inlined_call_operand.hbm [shape: f32[8,32], index: 0, kind: input, shape index: {}]   ;;  %s380_s1 = inlined_call_operand.hbm [shape: f32[288,128], index: 1, kind: input, shape index: {}]   ;;  %s381_s2 = inlined_call_operand.hbm [shape: f32[3,128], index: 2, kind: input, shape index: {}]   ;;  %s382_s3 = inlined_call_operand.hbm [shape: f32[8,128], index: 3, kind: output, shape index: {}]  }
   0x1   :  { %9 = vsyncpa [#allocation6], 0  ;;  %s26_s14 = sshll.u32 %s380_s1, 4  ;;  %s27_s14 = int_to_ptr.hbm [resolvable:$true] %s26_s14 }
   0x2   :  { %10 = vsyncpa [#allocation4], 0  ;;  %s339_s15 = smov [#allocation5]   ;;  %s16_s19 = sshll.u32 %s379_s0, 4  ;;  %s17_s19 = int_to_ptr.hbm [resolvable:$true] %s16_s19 }
   0x3   :  { %s28_s16 = sshll.u32 %s339_s15, 4  ;;  %s340_s20 = smov 128   ;;  %s29_s16 = int_to_ptr.vmem [resolvable:$true] %s28_s16 }
   0x4   :  { %s341_s21 = smov 8   ;;  %s342_s22 = smov [#allocation2]  }
   0x5   :  { %34 = dma.hbm_to_vmem [thread:$0]  %s27_s14, 4608, %s29_s16, [#allocation6], %s340_s20, %s340_s20, %s341_s21  }
   0x6   :  { %s18_s23 = sshll.u32 %s342_s22, 4  ;;  %s40_s26 = sshll.u32 %s381_s2, 4  ;;  %s19_s23 = int_to_ptr.vmem [resolvable:$true] %s18_s23  ;;  %s41_s26 = int_to_ptr.hbm [resolvable:$true] %s40_s26 }
   0x7   :  { %21 = dma.hbm_to_vmem [thread:$0]  %s17_s19, 128, %s19_s23, [#allocation3]  }
   0x8   :  { %s343_s1 = smov [#allocation7]  }
   0x9   :  { %s42_s27 = sshll.u32 %s343_s1, 4  ;;  %s43_s27 = int_to_ptr.vmem [resolvable:$true] %s42_s27 }
   0xa   :  { %45 = dma.hbm_to_vmem [thread:$0]  %s41_s26, 64, %s43_s27, [#allocation6]  }
   0xb   :  { %333 = dma.done.wait [#allocation3], 128  }
   0xc   :  { %334 = vsyncadd [#allocation3], 4294967168 }
   0xd   :  { %335 = dma.done.wait [#allocation6], 4672  }
   0xe   :  { %336 = vsyncadd [#allocation6], 4294962624  ;;  %v61_v0 = vld [vmem:[#allocation5 + $0x18] sm:$0xff]  ;;  %v60_v1 = vld [vmem:[#allocation5 + $0x10] sm:$0xff]  ;;  %vm99_vm0 = vcmask 261120   ;;  %s344_s0 = smov 122  }
   0xf   :  { %115 = vmatpush.msra.mxu0 %v61_v0  ;;  %v77_v2 = vld [vmem:[#allocation5 + $0x98] sm:$0xff]  ;;  %v59_v3 = vld [vmem:[#allocation5 + $0x8] sm:$0xff]  ;;  %v76_v4 = vld [vmem:[#allocation5 + $0x90] sm:$0xff]  ;;  %v345_v48 = vmov 6   ;;  %vm180_vm1 = vcmask 7168   ;;  %s346_s30 = smov [#allocation8]  }
  0x10   :  { %125 = vmatpush.msra.mxu1 %v77_v2  ;;  %v75_v5 = vld [vmem:[#allocation5 + $0x88] sm:$0xff]  ;;  %v58_v6 = vld [vmem:[#allocation5] sm:$0xff]  ;;  %v97_v7 = vld [vmem:[#allocation2] sm:$0xff]  ;;  %232 = vset.pattern.permute.xlu1 %v345_v48  ;;  %s206_s4 = sshll.u32 %s346_s30, 4  ;;  %s208_s8 = sshll.u32 %s382_s3, 4  ;;  %s207_s4 = int_to_ptr.vmem [resolvable:$true] %s206_s4  ;;  %s209_s8 = int_to_ptr.hbm [resolvable:$true] %s208_s8 }
  0x11   :  { %116 = vmatpush.msra.mxu0 %v60_v1  ;;  %v74_v8 = vld [vmem:[#allocation5 + $0x80] sm:$0xff]  ;;  %v73_v9 = vld [vmem:[#allocation5 + $0x78] sm:$0xff]  ;;  %v72_v10 = vld [vmem:[#allocation5 + $0x70] sm:$0xff]  ;;  %233 = vset.pattern.permute.xlu0 %v345_v48 }
  0x12   :  { %126 = vmatpush.msra.mxu1 %v76_v4  ;;  %v71_v11 = vld [vmem:[#allocation5 + $0x68] sm:$0xff]  ;;  %v70_v12 = vld [vmem:[#allocation5 + $0x60] sm:$0xff]  ;;  %v69_v13 = vld [vmem:[#allocation5 + $0x58] sm:$0xff] }
  0x13   :  { %117 = vmatpush.msra.mxu0 %v59_v3  ;;  %v68_v14 = vld [vmem:[#allocation5 + $0x50] sm:$0xff]  ;;  %v67_v15 = vld [vmem:[#allocation5 + $0x48] sm:$0xff]  ;;  %v66_v16 = vld [vmem:[#allocation5 + $0x40] sm:$0xff] }
  0x14   :  { %127 = vmatpush.msra.mxu1 %v75_v5  ;;  %v65_v17 = vld [vmem:[#allocation5 + $0x38] sm:$0xff]  ;;  %v64_v18 = vld [vmem:[#allocation5 + $0x30] sm:$0xff]  ;;  %v63_v19 = vld [vmem:[#allocation5 + $0x28] sm:$0xff] }
  0x15   :  { %118 = vmatpush.msra.mxu0 %v58_v6  ;;  %v62_v20 = vld [vmem:[#allocation5 + $0x20] sm:$0xff]  ;;  %v93_v21 = vld [vmem:[#allocation5 + $0x118] sm:$0xff]  ;;  %v92_v22 = vld [vmem:[#allocation5 + $0x110] sm:$0xff] }
  0x16   :  { %219 = vmatmul.msk.f32.vlgmr.msra.gmra.mxu0 %vm99_vm0, %v97_v7  ;;  %128 = vmatpush.msra.mxu1 %v74_v8  ;;  %v91_v23 = vld [vmem:[#allocation5 + $0x108] sm:$0xff]  ;;  %v90_v24 = vld [vmem:[#allocation5 + $0x100] sm:$0xff]  ;;  %v89_v25 = vld [vmem:[#allocation5 + $0xf8] sm:$0xff] }
  0x17   :  { %147 = vmatpush.msra.mxu2 %v93_v21  ;;  %v88_v26 = vld [vmem:[#allocation5 + $0xf0] sm:$0xff]  ;;  %v87_v27 = vld [vmem:[#allocation5 + $0xe8] sm:$0xff]  ;;  %v86_v28 = vld [vmem:[#allocation5 + $0xe0] sm:$0xff] }
  0x18   :  { %129 = vmatpush.msra.mxu1 %v73_v9  ;;  %v85_v29 = vld [vmem:[#allocation5 + $0xd8] sm:$0xff]  ;;  %v84_v30 = vld [vmem:[#allocation5 + $0xd0] sm:$0xff]  ;;  %v83_v31 = vld [vmem:[#allocation5 + $0xc8] sm:$0xff] }
  0x19   :  { %148 = vmatpush.msra.mxu2 %v92_v22  ;;  %v82_v32 = vld [vmem:[#allocation5 + $0xc0] sm:$0xff]  ;;  %v81_v33 = vld [vmem:[#allocation5 + $0xb8] sm:$0xff]  ;;  %v80_v38 = vld [vmem:[#allocation5 + $0xb0] sm:$0xff] }
  0x1a   :  { %130 = vmatpush.msra.mxu1 %v72_v10  ;;  %v234_v34 = vld [vmem:[#allocation7] ss:$0 sm:$0xff]  ;;  %v79_v39 = vld [vmem:[#allocation5 + $0xa8] sm:$0xff]  ;;  %v235_v41 = vld [vmem:[#allocation7 + $0x1] ss:$0 sm:$0xff] }
  0x1b   :  { %149 = vmatpush.msra.mxu2 %v91_v23  ;;  %v78_v40 = vld [vmem:[#allocation5 + $0xa0] sm:$0xff] }
  0x1c   :  { %131 = vmatpush.msra.mxu1 %v71_v11  ;;  %v236_v45 = vld [vmem:[#allocation7 + $0x2] ss:$0 sm:$0xff] }
  0x1d   :  { %150 = vmatpush.msra.mxu2 %v90_v24 }
  0x1e   :  { %132 = vmatpush.msra.mxu1 %v70_v12 }
  0x1f   :  { %151 = vmatpush.msra.mxu2 %v89_v25 }
  0x20   :  { %133 = vmatpush.msra.mxu1 %v69_v13 }
  0x21   :  { %152 = vmatpush.msra.mxu2 %v88_v26 }
  0x22   :  { %134 = vmatpush.msra.mxu1 %v68_v14 }
  0x23   :  { %153 = vmatpush.msra.mxu2 %v87_v27 }
  0x24   :  { %135 = vmatpush.msra.mxu1 %v67_v15 }
  0x25   :  { %154 = vmatpush.msra.mxu2 %v86_v28 }
  0x26   :  { %136 = vmatpush.msra.mxu1 %v66_v16 }
  0x27   :  { %155 = vmatpush.msra.mxu2 %v85_v29 }
  0x28   :  { %137 = vmatpush.msra.mxu1 %v65_v17 }
  0x29   :  { %156 = vmatpush.msra.mxu2 %v84_v30 }
  0x2a   :  { %138 = vmatpush.msra.mxu1 %v64_v18 }
  0x2b   :  { %157 = vmatpush.msra.mxu2 %v83_v31 }
  0x2c   :  { %139 = vmatpush.msra.mxu1 %v63_v19 }
  0x2d   :  { %158 = vmatpush.msra.mxu2 %v82_v32 }
  0x2e   :  { %140 = vmatpush.msra.mxu1 %v62_v20 }
  0x2f   :  { %159 = vmatpush.msra.mxu2 %v81_v33 }
  0x31   :  { %160 = vmatpush.msra.mxu2 %v80_v38 }
  0x33   :  { %161 = vmatpush.msra.mxu2 %v79_v39 }
  0x35   :  { %162 = vmatpush.msra.mxu2 %v78_v40 }
  0x93   :  { %v120_v35 = vpop.f32.mrf.mxu0 }
  0x94   :  { %v121_v36 = vadd.f32 %v234_v34, %v120_v35 }
  0x96   :  { %v123_v37 = vmax.f32 %v121_v36, 0.0 }
  0x98   :  { %141 = vmatmul.f32.vlgmr.msra.gmra.mxu1 %v123_v37 }
 0x115   :  { %v142_v42 = vpop.f32.mrf.mxu1 }
 0x116   :  { %v143_v43 = vadd.f32 %v235_v41, %v142_v42 }
 0x118   :  { %v145_v44 = vmax.f32 %v143_v43, 0.0 }
 0x11a   :  { %163 = vmatmul.f32.vlgmr.msra.gmra.mxu2 %v145_v44 }
 0x19d   :  { %v164_v46 = vpop.f32.mrf.mxu2 }
 0x19e   :  { %v165_v47 = vadd.f32 %v236_v45, %v164_v46 }
 0x1a0   :  { %177 = vrot.lane.b32.xlu0 %v165_v47, %s344_s0 }
 0x1ca   :  { %167 = vadd.xlane.f32.xlu0 %v165_v47 }
 0x212   :  { %v178_v49 = vpop.permute.xlu0 %177 }
 0x213   :  { %v181_v50 = vsel %vm180_vm1, %v178_v49, 0.0 }
 0x214   :  { %182 = vadd.xlane.f32.xlu1 %v181_v50 }
 0x22d   :  { %194 = vperm.xlu1 %232, %v165_v47  }
 0x23d   :  { %v168_v51 = vpop.xlane.xlu0 %167 }
 0x23e   :  { %v169_v52 = vrot.slane %v168_v51, 4 }
 0x240   :  { %v170_v53 = vadd.f32 %v169_v52, %v168_v51 }
 0x242   :  { %v171_v54 = vrot.slane %v170_v53, 2 }
 0x244   :  { %v172_v55 = vadd.f32 %v171_v54, %v170_v53 }
 0x246   :  { %v173_v56 = vrot.slane %v172_v55, 1 }
 0x248   :  { %v174_v57 = vadd.f32 %v173_v56, %v172_v55 }
 0x24a   :  { %220 = vpush %v174_v57 }
 0x27b   :  { %s221_s2 = spop %220 }
 0x287   :  { %v183_v58 = vpop.xlane.xlu1 %182 }
 0x288   :  { %v184_v59 = vrot.slane %v183_v58, 4 }
 0x28a   :  { %v185_v60 = vadd.f32 %v184_v59, %v183_v58 }
 0x28c   :  { %v186_v61 = vrot.slane %v185_v60, 2 }
 0x28e   :  { %v187_v62 = vadd.f32 %v186_v61, %v185_v60 }
 0x290   :  { %v188_v63 = vrot.slane %v187_v62, 1 }
 0x292   :  { %v189_v0 = vadd.f32 %v188_v63, %v187_v62 }
 0x294   :  { %222 = vpush %v189_v0 }
 0x29f   :  { %v195_v1 = vpop.permute.xlu1 %194 }
 0x2a0   :  { %v197_v2 = vadd.f32 %v195_v1, %v165_v47 }
 0x2c5   :  { %s223_s28 = spop %222 }
 0x2c6   :  { %s191_s29 = ssub.f32 %s221_s2, %s223_s28 }
 0x2c8   :  { %s192_s5 = smul.f32 0.020833334, %s191_s29 }
 0x2ca   :  { %v198_v3 = vstv %s192_s5 }
 0x2cb   :  { %v199_v4 = vsub.f32 %v197_v2, %v198_v3 }
 0x2cd   :  { %200 = vst [vmem:[#allocation8] sm:$0xff] %v199_v4 }
 0x2ce   :  { %211 = dma.vmem_to_hbm [thread:$0]  %s207_s4, 128, %s209_s8, [#allocation4]  }
 0x2cf   :  { %337 = dma.done.wait [#allocation4], 128  }
 0x2d0   :  { %338 = vsyncadd [#allocation4], 4294967168 }
 0x2d1   :  { %216 = vsyncpa [#allocation3], 1 }
 0x2d2   :  { %217 = vsyncpa [#allocation6], 1 }
 0x2d3   :  { %218 = vsyncpa [#allocation4], 1 }

</bundles_post_ra>
